<compile_context>
chip_gen: v7x
topology: tpu7x:2x2x1
jax: 0.10.0
libtpu: 0.0.40
codegen_flags: <defaults>
</compile_context>

<pallas_src>
import jax
import jax.numpy as jnp
from jax.experimental import pallas as pl
from jax.experimental.pallas import tpu as pltpu


def post_predict_kernel(content_ref, uemb_ref,
                        ls1w_ref, ls1b_ref,
                        ls2w_ref, ls2b_ref,
                        l1wc_ref, l1wu_ref, l1b_ref,
                        l2w_ref, l2b_ref,
                        l3w_ref, l3b_ref,
                        out_ref):
    f32 = jnp.float32
    bf16 = jnp.bfloat16

    # content branch: relu(ls1) -> relu(ls2).  `content` arrives f32 straight
    # from HBM (no wrapper convert); cast to bf16 on the VPU right before the
    # MXU dot.  Accumulation, biases and ReLU stay f32.
    c = content_ref[...].astype(bf16)                               # (T,768)
    h = jnp.dot(c, ls1w_ref[...], preferred_element_type=f32) + ls1b_ref[...]
    h = jnp.maximum(h, 0.0)                                         # (T,200) f32
    h = jnp.dot(h.astype(bf16), ls2w_ref[...],
                preferred_element_type=f32) + ls2b_ref[...]
    h = jnp.maximum(h, 0.0)                                         # (T,20) f32

    # l1 over concat([content20, u_emb]) expressed as a split matmul:
    #   emb @ W1 == content20 @ W1[:20] + u_emb @ W1[20:]
    u = uemb_ref[...]                                               # (T,30) bf16
    p = (jnp.dot(h.astype(bf16), l1wc_ref[...], preferred_element_type=f32)
         + jnp.dot(u, l1wu_ref[...], preferred_element_type=f32)
         + l1b_ref[...])
    p = jnp.maximum(p, 0.0)                                         # (T,20) f32

    p = jnp.dot(p.astype(bf16), l2w_ref[...],
                preferred_element_type=f32) + l2b_ref[...]
    p = jnp.maximum(p, 0.0)                                         # (T,5) f32

    out_ref[...] = (jnp.dot(p.astype(bf16), l3w_ref[...],
                            preferred_element_type=f32)
                    + l3b_ref[...])                                 # (T,2) f32


def make_params(key, vocab_size):
    """Deterministic parameter init matching the PyTorch module's shapes
    (weights stored as (in, out)), all f32."""
    ks = jax.random.split(key, 12)

    def lin(kw, kb, fan_in, fan_out):
        bound = 1.0 / jnp.sqrt(fan_in)
        w = jax.random.uniform(kw, (fan_in, fan_out), jnp.float32, -bound, bound)
        b = jax.random.uniform(kb, (1, fan_out), jnp.float32, -bound, bound)
        return w, b

    params = {}
    params["emb"] = jax.random.normal(ks[0], (vocab_size, 15), jnp.float32)
    params["ls1_w"], params["ls1_b"] = lin(ks[1], ks[2], 768, 200)
    params["ls2_w"], params["ls2_b"] = lin(ks[3], ks[4], 200, 20)
    params["l1_w"],  params["l1_b"]  = lin(ks[5], ks[6], 50, 20)
    params["l2_w"],  params["l2_b"]  = lin(ks[7], ks[8], 20, 5)
    params["l3_w"],  params["l3_b"]  = lin(ks[9], ks[10], 5, 2)
    return params


def prepare_params(params):
    """One-time (model-load) weight prep: l1 split + bf16 casts.  Hoisted out
    of the serving path so the per-call graph is a single gather + the
    pallas_call (no per-call weight re-reads / converts)."""
    bf16 = jnp.bfloat16
    return {
        # bf16 table -> jnp.take emits bf16 directly (no extra convert op).
        "emb_bf16": params["emb"].astype(bf16),
        "weights": (
            params["ls1_w"].astype(bf16), params["ls1_b"],
            params["ls2_w"].astype(bf16), params["ls2_b"],
            params["l1_w"][:20, :].astype(bf16),   # content part of l1 (20,20)
            params["l1_w"][20:, :].astype(bf16),   # embedding part of l1 (30,20)
            params["l1_b"],
            params["l2_w"].astype(bf16), params["l2_b"],
            params["l3_w"].astype(bf16), params["l3_b"],
        ),
    }


def _round_up(x, m):
    return ((x + m - 1) // m) * m


def post_predict(prepped, weiboid, userid, content, *, tile_b=1024):
    """weiboid: unused (kept for signature fidelity with the PyTorch module).
    userid: (B, 2) int32 indices; content: (B, 768) float32."""
    del weiboid  # unused in the original forward as well
    B = content.shape[0]

    # Embedding gather (glue, plain JAX); table is bf16 so this writes bf16.
    # TODO(synk): at small serving B, fold this gather into the kernel via
    # PrefetchScalarGridSpec(num_scalar_prefetch=1) with userid in SMEM and
    # per-row async copies from an HBM-resident (pl.ANY) table, overlapped
    # with the 768x200 matmul of the current tile.
    u_emb = jnp.take(prepped["emb_bf16"], userid, axis=0).reshape(B, -1)

    weights = prepped["weights"]

    # Batch tile: large tiles amortize the ~0.35 us/step grid overhead and
    # keep the content DMA per step well above the fixed cost; 16-row
    # alignment keeps bf16 sublane packing whole.  On v7x (B > 256) cap the
    # tile so the grid has >= 2 steps and the "parallel" batch axis actually
    # shards across both TensorCores.  VMEM at T=1024 (f32 content): ~6 MB of
    # double-buffered content + ~2 MB intermediates + <1 MB resident weights,
    # far under the 32 MiB scoped default (raise vmem_limit_bytes if tile_b
    # is pushed to 2048+).
    if B <= 16:
        T = B                                   # full-dim block at tiny B
    else:
        T = min(tile_b, _round_up(B, 16))
        if B > 256:
            T = min(T, _round_up(pl.cdiv(B, 2), 16))
    grid = (pl.cdiv(B, T),)

    def batch_spec(cols):
        return pl.BlockSpec((T, cols), lambda i: (i, 0))

    def whole_spec(arr):
        # Constant index_map -> the block stays resident across the batch grid.
        return pl.BlockSpec(arr.shape, lambda i: (0, 0))

    in_specs = ([batch_spec(768), batch_spec(30)]
                + [whole_spec(a) for a in weights])
    out_spec = batch_spec(2)

    flops = 2 * B * (768 * 200 + 200 * 20 + 50 * 20 + 20 * 5 + 5 * 2)
    act_bytes = B * (768 * 4 + 30 * 2 + 2 * 4)          # f32 content in, bf16 u_emb, f32 out
    wgt_bytes = sum(int(a.size) * a.dtype.itemsize for a in weights)
    cost = pl.CostEstimate(flops=flops, transcendentals=0,
                           bytes_accessed=act_bytes + wgt_bytes)

    return pl.pallas_call(
        post_predict_kernel,
        out_shape=jax.ShapeDtypeStruct((B, 2), jnp.float32),
        grid=grid,
        in_specs=in_specs,
        out_specs=out_spec,
        compiler_params=pltpu.CompilerParams(
            dimension_semantics=("parallel",)),
        cost_estimate=cost,
    )(content, u_emb, *weights)


def post_predict_ref(params, weiboid, userid, content):
    """Pure-JAX f32 reference mirroring the PyTorch forward exactly."""
    del weiboid
    B = content.shape[0]
    c = jnp.maximum(content @ params["ls1_w"] + params["ls1_b"], 0.0)
    c = jnp.maximum(c @ params["ls2_w"] + params["ls2_b"], 0.0)
    u = jnp.take(params["emb"], userid, axis=0).reshape(B, -1)
    emb = jnp.concatenate([c, u], axis=1)
    p = jnp.maximum(emb @ params["l1_w"] + params["l1_b"], 0.0)
    p = jnp.maximum(p @ params["l2_w"] + params["l2_b"], 0.0)
    return p @ params["l3_w"] + params["l3_b"]


if __name__ == "__main__":
    key = jax.random.PRNGKey(0)
    k_param, k_uid, k_content, k_wid = jax.random.split(key, 4)

    VOCAB = 2048  # synthetic small vocab standing in for 2,181,735 rows
    params = make_params(k_param, VOCAB)
    prepped = prepare_params(params)   # model-load-time weight prep

    # --- small canonical check (B=8, single grid step) ---
    B = 8
    userid = jax.random.randint(k_uid, (B, 2), 0, VOCAB, dtype=jnp.int32)
    content = jax.random.normal(k_content, (B, 768), jnp.float32)
    weiboid = jax.random.randint(k_wid, (B,), 0, 10_000, dtype=jnp.int32)

    out = jax.block_until_ready(post_predict(prepped, weiboid, userid, content))
    ref = post_predict_ref(params, weiboid, userid, content)
    assert out.shape == (B, 2) and out.dtype == jnp.float32
    # bf16 weights / bf16-cast activations vs f32 reference -> loosened tolerance.
    assert jnp.allclose(out, ref, atol=3e-2, rtol=3e-2), "mismatch vs f32 reference (B=8)"

    # --- multi-tile check with a partial last tile (B=40, T=16 -> grid=(3,)) ---
    B2 = 40
    k_uid2, k_content2 = jax.random.split(jax.random.PRNGKey(1), 2)
    userid2 = jax.random.randint(k_uid2, (B2, 2), 0, VOCAB, dtype=jnp.int32)
    content2 = jax.random.normal(k_content2, (B2, 768), jnp.float32)
    weiboid2 = jnp.zeros((B2,), jnp.int32)

    out2 = jax.block_until_ready(
        post_predict(prepped, weiboid2, userid2, content2, tile_b=16))
    ref2 = post_predict_ref(params, weiboid2, userid2, content2)
    assert out2.shape == (B2, 2) and out2.dtype == jnp.float32
    assert jnp.allclose(out2, ref2, atol=3e-2, rtol=3e-2), "mismatch vs f32 reference (B=40)"

    print("KERNEL_OK")
</pallas_src>

<mosaic_0001>
module attributes {stable_mosaic.version = 11 : i64} {
  func.func @post_predict_kernel(%arg0: i32, %arg1: memref<8x768xf32, #tpu.memory_space<vmem>>, %arg2: memref<8x30xbf16, #tpu.memory_space<vmem>>, %arg3: memref<768x200xbf16, #tpu.memory_space<vmem>>, %arg4: memref<1x200xf32, #tpu.memory_space<vmem>>, %arg5: memref<200x20xbf16, #tpu.memory_space<vmem>>, %arg6: memref<1x20xf32, #tpu.memory_space<vmem>>, %arg7: memref<20x20xbf16, #tpu.memory_space<vmem>>, %arg8: memref<30x20xbf16, #tpu.memory_space<vmem>>, %arg9: memref<1x20xf32, #tpu.memory_space<vmem>>, %arg10: memref<20x5xbf16, #tpu.memory_space<vmem>>, %arg11: memref<1x5xf32, #tpu.memory_space<vmem>>, %arg12: memref<5x2xbf16, #tpu.memory_space<vmem>>, %arg13: memref<1x2xf32, #tpu.memory_space<vmem>>, %arg14: memref<8x2xf32, #tpu.memory_space<vmem>>) attributes {dimension_semantics = [#tpu.dimension_semantics<parallel>], iteration_bounds = array<i64: 1>, scalar_prefetch = 0 : i64, scratch_operands = 0 : i64, tpu.core_type = #tpu.core_type<tc>, window_params = [{transform_indices = @transform_0, window_bounds = array<i64: 8, 768>}, {transform_indices = @transform_1, window_bounds = array<i64: 8, 30>}, {pipeline_mode = #tpu.pipeline_mode<synchronous>, transform_indices = @transform_2, window_bounds = array<i64: 768, 200>}, {pipeline_mode = #tpu.pipeline_mode<synchronous>, transform_indices = @transform_3, window_bounds = array<i64: 1, 200>}, {pipeline_mode = #tpu.pipeline_mode<synchronous>, transform_indices = @transform_4, window_bounds = array<i64: 200, 20>}, {pipeline_mode = #tpu.pipeline_mode<synchronous>, transform_indices = @transform_5, window_bounds = array<i64: 1, 20>}, {pipeline_mode = #tpu.pipeline_mode<synchronous>, transform_indices = @transform_6, window_bounds = array<i64: 20, 20>}, {pipeline_mode = #tpu.pipeline_mode<synchronous>, transform_indices = @transform_7, window_bounds = array<i64: 30, 20>}, {pipeline_mode = #tpu.pipeline_mode<synchronous>, transform_indices = @transform_8, window_bounds = array<i64: 1, 20>}, {pipeline_mode = #tpu.pipeline_mode<synchronous>, transform_indices = @transform_9, window_bounds = array<i64: 20, 5>}, {pipeline_mode = #tpu.pipeline_mode<synchronous>, transform_indices = @transform_10, window_bounds = array<i64: 1, 5>}, {pipeline_mode = #tpu.pipeline_mode<synchronous>, transform_indices = @transform_11, window_bounds = array<i64: 5, 2>}, {pipeline_mode = #tpu.pipeline_mode<synchronous>, transform_indices = @transform_12, window_bounds = array<i64: 1, 2>}, {transform_indices = @transform_13, window_bounds = array<i64: 8, 2>}]} {
    %c0 = arith.constant 0 : index
    %c0_0 = arith.constant 0 : index
    %0 = vector.load %arg1[%c0, %c0_0] : memref<8x768xf32, #tpu.memory_space<vmem>>, vector<8x768xf32>
    %1 = arith.truncf %0 : vector<8x768xf32> to vector<8x768xbf16>
    %c0_1 = arith.constant 0 : index
    %c0_2 = arith.constant 0 : index
    %2 = vector.load %arg3[%c0_1, %c0_2] : memref<768x200xbf16, #tpu.memory_space<vmem>>, vector<768x200xbf16>
    %cst = arith.constant dense<0.000000e+00> : vector<8x200xf32>
    %3 = tpu.matmul %1, %2, %cst {dimension_numbers = #tpu.dot_dimension_numbers<[1], [0], [0], [1], [0, 0, 1, 1], [], []>} : vector<8x768xbf16>, vector<768x200xbf16>, vector<8x200xf32> -> vector<8x200xf32>
    %c0_3 = arith.constant 0 : index
    %c0_4 = arith.constant 0 : index
    %4 = vector.load %arg4[%c0_3, %c0_4] : memref<1x200xf32, #tpu.memory_space<vmem>>, vector<1x200xf32>
    %5 = vector.broadcast %4 : vector<1x200xf32> to vector<8x200xf32>
    %6 = arith.addf %3, %5 : vector<8x200xf32>
    %cst_5 = arith.constant 0.000000e+00 : f32
    %7 = vector.broadcast %cst_5 : f32 to vector<8x200xf32>
    %8 = arith.maximumf %6, %7 : vector<8x200xf32>
    %9 = arith.truncf %8 : vector<8x200xf32> to vector<8x200xbf16>
    %c0_6 = arith.constant 0 : index
    %c0_7 = arith.constant 0 : index
    %10 = vector.load %arg5[%c0_6, %c0_7] : memref<200x20xbf16, #tpu.memory_space<vmem>>, vector<200x20xbf16>
    %cst_8 = arith.constant dense<0.000000e+00> : vector<8x20xf32>
    %11 = tpu.matmul %9, %10, %cst_8 {dimension_numbers = #tpu.dot_dimension_numbers<[1], [0], [0], [1], [0, 0, 1, 1], [], []>} : vector<8x200xbf16>, vector<200x20xbf16>, vector<8x20xf32> -> vector<8x20xf32>
    %c0_9 = arith.constant 0 : index
    %c0_10 = arith.constant 0 : index
    %12 = vector.load %arg6[%c0_9, %c0_10] : memref<1x20xf32, #tpu.memory_space<vmem>>, vector<1x20xf32>
    %13 = vector.broadcast %12 : vector<1x20xf32> to vector<8x20xf32>
    %14 = arith.addf %11, %13 : vector<8x20xf32>
    %cst_11 = arith.constant 0.000000e+00 : f32
    %15 = vector.broadcast %cst_11 : f32 to vector<8x20xf32>
    %16 = arith.maximumf %14, %15 : vector<8x20xf32>
    %c0_12 = arith.constant 0 : index
    %c0_13 = arith.constant 0 : index
    %17 = vector.load %arg2[%c0_12, %c0_13] : memref<8x30xbf16, #tpu.memory_space<vmem>>, vector<8x30xbf16>
    %18 = arith.truncf %16 : vector<8x20xf32> to vector<8x20xbf16>
    %c0_14 = arith.constant 0 : index
    %c0_15 = arith.constant 0 : index
    %19 = vector.load %arg7[%c0_14, %c0_15] : memref<20x20xbf16, #tpu.memory_space<vmem>>, vector<20x20xbf16>
    %cst_16 = arith.constant dense<0.000000e+00> : vector<8x20xf32>
    %20 = tpu.matmul %18, %19, %cst_16 {dimension_numbers = #tpu.dot_dimension_numbers<[1], [0], [0], [1], [0, 0, 1, 1], [], []>} : vector<8x20xbf16>, vector<20x20xbf16>, vector<8x20xf32> -> vector<8x20xf32>
    %c0_17 = arith.constant 0 : index
    %c0_18 = arith.constant 0 : index
    %21 = vector.load %arg8[%c0_17, %c0_18] : memref<30x20xbf16, #tpu.memory_space<vmem>>, vector<30x20xbf16>
    %cst_19 = arith.constant dense<0.000000e+00> : vector<8x20xf32>
    %22 = tpu.matmul %17, %21, %cst_19 {dimension_numbers = #tpu.dot_dimension_numbers<[1], [0], [0], [1], [0, 0, 1, 1], [], []>} : vector<8x30xbf16>, vector<30x20xbf16>, vector<8x20xf32> -> vector<8x20xf32>
    %23 = arith.addf %20, %22 : vector<8x20xf32>
    %c0_20 = arith.constant 0 : index
    %c0_21 = arith.constant 0 : index
    %24 = vector.load %arg9[%c0_20, %c0_21] : memref<1x20xf32, #tpu.memory_space<vmem>>, vector<1x20xf32>
    %25 = vector.broadcast %24 : vector<1x20xf32> to vector<8x20xf32>
    %26 = arith.addf %23, %25 : vector<8x20xf32>
    %cst_22 = arith.constant 0.000000e+00 : f32
    %27 = vector.broadcast %cst_22 : f32 to vector<8x20xf32>
    %28 = arith.maximumf %26, %27 : vector<8x20xf32>
    %29 = arith.truncf %28 : vector<8x20xf32> to vector<8x20xbf16>
    %c0_23 = arith.constant 0 : index
    %c0_24 = arith.constant 0 : index
    %30 = vector.load %arg10[%c0_23, %c0_24] : memref<20x5xbf16, #tpu.memory_space<vmem>>, vector<20x5xbf16>
    %cst_25 = arith.constant dense<0.000000e+00> : vector<8x5xf32>
    %31 = tpu.matmul %29, %30, %cst_25 {dimension_numbers = #tpu.dot_dimension_numbers<[1], [0], [0], [1], [0, 0, 1, 1], [], []>} : vector<8x20xbf16>, vector<20x5xbf16>, vector<8x5xf32> -> vector<8x5xf32>
    %c0_26 = arith.constant 0 : index
    %c0_27 = arith.constant 0 : index
    %32 = vector.load %arg11[%c0_26, %c0_27] : memref<1x5xf32, #tpu.memory_space<vmem>>, vector<1x5xf32>
    %33 = vector.broadcast %32 : vector<1x5xf32> to vector<8x5xf32>
    %34 = arith.addf %31, %33 : vector<8x5xf32>
    %cst_28 = arith.constant 0.000000e+00 : f32
    %35 = vector.broadcast %cst_28 : f32 to vector<8x5xf32>
    %36 = arith.maximumf %34, %35 : vector<8x5xf32>
    %37 = arith.truncf %36 : vector<8x5xf32> to vector<8x5xbf16>
    %c0_29 = arith.constant 0 : index
    %c0_30 = arith.constant 0 : index
    %38 = vector.load %arg12[%c0_29, %c0_30] : memref<5x2xbf16, #tpu.memory_space<vmem>>, vector<5x2xbf16>
    %cst_31 = arith.constant dense<0.000000e+00> : vector<8x2xf32>
    %39 = tpu.matmul %37, %38, %cst_31 {dimension_numbers = #tpu.dot_dimension_numbers<[1], [0], [0], [1], [0, 0, 1, 1], [], []>} : vector<8x5xbf16>, vector<5x2xbf16>, vector<8x2xf32> -> vector<8x2xf32>
    %c0_32 = arith.constant 0 : index
    %c0_33 = arith.constant 0 : index
    %40 = vector.load %arg13[%c0_32, %c0_33] : memref<1x2xf32, #tpu.memory_space<vmem>>, vector<1x2xf32>
    %41 = vector.broadcast %40 : vector<1x2xf32> to vector<8x2xf32>
    %42 = arith.addf %39, %41 : vector<8x2xf32>
    %c0_34 = arith.constant 0 : index
    %c0_35 = arith.constant 0 : index
    %43 = vector.load %arg14[%c0_34, %c0_35] : memref<8x2xf32, #tpu.memory_space<vmem>>, vector<8x2xf32>
    tpu.vector_store %arg14[%c0_34, %c0_35], %42 {strides = array<i32>} : memref<8x2xf32, #tpu.memory_space<vmem>>, vector<8x2xf32>,
    return
  }
  func.func @transform_0(%arg0: i32) -> (i32, i32) {
    %c0_i32 = arith.constant 0 : i32
    %c0_i32_0 = arith.constant 0 : i32
    return %arg0, %c0_i32 : i32, i32
  }
  func.func @transform_1(%arg0: i32) -> (i32, i32) {
    %c0_i32 = arith.constant 0 : i32
    %c0_i32_0 = arith.constant 0 : i32
    return %arg0, %c0_i32 : i32, i32
  }
  func.func @transform_2(%arg0: i32) -> (i32, i32) {
    %c0_i32 = arith.constant 0 : i32
    %c0_i32_0 = arith.constant 0 : i32
    %c0_i32_1 = arith.constant 0 : i32
    return %c0_i32, %c0_i32_0 : i32, i32
  }
  func.func @transform_3(%arg0: i32) -> (i32, i32) {
    %c0_i32 = arith.constant 0 : i32
    %c0_i32_0 = arith.constant 0 : i32
    %c0_i32_1 = arith.constant 0 : i32
    return %c0_i32, %c0_i32_0 : i32, i32
  }
  func.func @transform_4(%arg0: i32) -> (i32, i32) {
    %c0_i32 = arith.constant 0 : i32
    %c0_i32_0 = arith.constant 0 : i32
    %c0_i32_1 = arith.constant 0 : i32
    return %c0_i32, %c0_i32_0 : i32, i32
  }
  func.func @transform_5(%arg0: i32) -> (i32, i32) {
    %c0_i32 = arith.constant 0 : i32
    %c0_i32_0 = arith.constant 0 : i32
    %c0_i32_1 = arith.constant 0 : i32
    return %c0_i32, %c0_i32_0 : i32, i32
  }
  func.func @transform_6(%arg0: i32) -> (i32, i32) {
    %c0_i32 = arith.constant 0 : i32
    %c0_i32_0 = arith.constant 0 : i32
    %c0_i32_1 = arith.constant 0 : i32
    return %c0_i32, %c0_i32_0 : i32, i32
  }
  func.func @transform_7(%arg0: i32) -> (i32, i32) {
    %c0_i32 = arith.constant 0 : i32
    %c0_i32_0 = arith.constant 0 : i32
    %c0_i32_1 = arith.constant 0 : i32
    return %c0_i32, %c0_i32_0 : i32, i32
  }
  func.func @transform_8(%arg0: i32) -> (i32, i32) {
    %c0_i32 = arith.constant 0 : i32
    %c0_i32_0 = arith.constant 0 : i32
    %c0_i32_1 = arith.constant 0 : i32
    return %c0_i32, %c0_i32_0 : i32, i32
  }
  func.func @transform_9(%arg0: i32) -> (i32, i32) {
    %c0_i32 = arith.constant 0 : i32
    %c0_i32_0 = arith.constant 0 : i32
    %c0_i32_1 = arith.constant 0 : i32
    return %c0_i32, %c0_i32_0 : i32, i32
  }
  func.func @transform_10(%arg0: i32) -> (i32, i32) {
    %c0_i32 = arith.constant 0 : i32
    %c0_i32_0 = arith.constant 0 : i32
    %c0_i32_1 = arith.constant 0 : i32
    return %c0_i32, %c0_i32_0 : i32, i32
  }
  func.func @transform_11(%arg0: i32) -> (i32, i32) {
    %c0_i32 = arith.constant 0 : i32
    %c0_i32_0 = arith.constant 0 : i32
    %c0_i32_1 = arith.constant 0 : i32
    return %c0_i32, %c0_i32_0 : i32, i32
  }
  func.func @transform_12(%arg0: i32) -> (i32, i32) {
    %c0_i32 = arith.constant 0 : i32
    %c0_i32_0 = arith.constant 0 : i32
    %c0_i32_1 = arith.constant 0 : i32
    return %c0_i32, %c0_i32_0 : i32, i32
  }
  func.func @transform_13(%arg0: i32) -> (i32, i32) {
    %c0_i32 = arith.constant 0 : i32
    %c0_i32_0 = arith.constant 0 : i32
    return %arg0, %c0_i32 : i32, i32
  }
}

</mosaic_0001>

<bundles_post_ra>
// kernel: tpu_custom_call.1
= control target key start
LH: loop header
LB: loop body
LE: loop exit
PB: predicated region body
PF: predicated region fallthrough
CT: control target
= control target key end

     0   :  { %vm883_vm0 = vcmask 1043456   ;;  %vm879_vm1 = vcmask 588800   ;;  %vm952_vm2 = vcmask 1046528   ;;  %vm1009_vm3 = vcmask 1041408   ;;  %s2028_s2 = inlined_call_operand.vmem [shape: bf16[768,200], index: 2, kind: input, shape index: {}]   ;;  %s2029_s0 = inlined_call_operand.vmem [shape: f32[8,768], index: 0, kind: input, shape index: {}]   ;;  %s2030_s4 = inlined_call_operand.vmem [shape: bf16[200,20], index: 4, kind: input, shape index: {}]   ;;  %s2031_s7 = inlined_call_operand.vmem [shape: bf16[30,20], index: 7, kind: input, shape index: {}]   ;;  %s2032_s6 = inlined_call_operand.vmem [shape: bf16[20,20], index: 6, kind: input, shape index: {}]   ;;  %s2033_s3 = inlined_call_operand.vmem [shape: f32[1,200], index: 3, kind: input, shape index: {}]   ;;  %s2034_s1 = inlined_call_operand.vmem [shape: bf16[8,30], index: 1, kind: input, shape index: {}]   ;;  %s2035_s5 = inlined_call_operand.vmem [shape: f32[1,20], index: 5, kind: input, shape index: {}]   ;;  %s2036_s9 = inlined_call_operand.vmem [shape: bf16[20,5], index: 9, kind: input, shape index: {}]   ;;  %s2037_s8 = inlined_call_operand.vmem [shape: f32[1,20], index: 8, kind: input, shape index: {}]   ;;  %s2038_s11 = inlined_call_operand.vmem [shape: bf16[5,2], index: 11, kind: input, shape index: {}]   ;;  %s2039_s10 = inlined_call_operand.vmem [shape: f32[1,5], index: 10, kind: input, shape index: {}]   ;;  %s2040_s12 = inlined_call_operand.vmem [shape: f32[1,2], index: 12, kind: input, shape index: {}]   ;;  %s2041_s13 = inlined_call_operand.vmem [shape: f32[8,2], index: 13, kind: output, shape index: {}]  }
   0x1   :  { %v1371_v0 = vld [vmem:[%s2028_s2 + $0x104] ss:$8 sps:$4 sm:$0xff]   ;;  %v1373_v1 = vld [vmem:[%s2028_s2 + $0x100] ss:$8 sps:$4 sm:$0xff]   ;;  %v1374_v2 = vld [vmem:[%s2028_s2 + $0x114] ss:$8 sps:$4 sm:$0xff]  }
   0x2   :  { %686 = vmatprep.subr.bf16.mxu0 %v1371_v0  ;;  %v1376_v3 = vld [vmem:[%s2028_s2 + $0x110] ss:$8 sps:$4 sm:$0xff]   ;;  %v1377_v4 = vld [vmem:[%s2028_s2 + $0x124] ss:$8 sps:$4 sm:$0xff]   ;;  %v1379_v5 = vld [vmem:[%s2028_s2 + $0x120] ss:$8 sps:$4 sm:$0xff]  }
   0x3   :  { %687 = vmatpush1.bf16.msra.mxu0 %v1373_v1  ;;  %v1380_v6 = vld [vmem:[%s2028_s2 + $0x134] ss:$8 sps:$4 sm:$0xff]   ;;  %v1382_v7 = vld [vmem:[%s2028_s2 + $0x130] ss:$8 sps:$4 sm:$0xff]   ;;  %v1383_v8 = vld [vmem:[%s2028_s2 + $0x144] ss:$8 sps:$4 sm:$0xff]  }
   0x4   :  { %688 = vmatprep.subr.bf16.mxu0 %v1374_v2  ;;  %v1385_v9 = vld [vmem:[%s2028_s2 + $0x140] ss:$8 sps:$4 sm:$0xff]   ;;  %v1386_v10 = vld [vmem:[%s2028_s2 + $0x154] ss:$8 sps:$4 sm:$0xff]   ;;  %v1388_v11 = vld [vmem:[%s2028_s2 + $0x150] ss:$8 sps:$4 sm:$0xff]  }
   0x5   :  { %v1389_v12 = vld [vmem:[%s2028_s2 + $0x164] ss:$8 sps:$4 sm:$0xff]   ;;  %v1418_v14 = vld [vmem:[%s2028_s2] ss:$8 sps:$4 sm:$0xff]   ;;  %v1392_v16 = vld [vmem:[%s2028_s2 + $0x174] ss:$8 sps:$4 sm:$0xff]  }
   0x6   :  { %v1416_v13 = vld [vmem:[%s2028_s2 + $0x4] ss:$8 sps:$4 sm:$0xff]   ;;  %v1391_v15 = vld [vmem:[%s2028_s2 + $0x160] ss:$8 sps:$4 sm:$0xff]   ;;  %v1422_v17 = vld [vmem:[%s2028_s2 + $0x14] ss:$8 sps:$4 sm:$0xff]  }
   0x7   :  { %689 = vmatpush1.bf16.msra.mxu0 %v1376_v3  ;;  %645 = vmatprep.subr.bf16.mxu1 %v1416_v13  ;;  %v1424_v18 = vld [vmem:[%s2028_s2 + $0x10] ss:$8 sps:$4 sm:$0xff]   ;;  %v1428_v22 = vld [vmem:[%s2028_s2 + $0x24] ss:$8 sps:$4 sm:$0xff]   ;;  %v1430_v23 = vld [vmem:[%s2028_s2 + $0x20] ss:$8 sps:$4 sm:$0xff]  }
   0x8   :  { %690 = vmatprep.subr.bf16.mxu0 %v1377_v4  ;;  %646 = vmatpush1.bf16.msra.mxu1 %v1418_v14  ;;  %v48_v19 = vld [vmem:[%s2029_s0 + $0x18] sm:$0xff]  ;;  %v1395_v24 = vld [vmem:[%s2028_s2 + $0x184] ss:$8 sps:$4 sm:$0xff]   ;;  %v1397_v26 = vld [vmem:[%s2028_s2 + $0x180] ss:$8 sps:$4 sm:$0xff]   ;;  %vm1536_vm4 = vmmov 0  }
   0x9   :  { %v1394_v20 = vld [vmem:[%s2028_s2 + $0x170] ss:$8 sps:$4 sm:$0xff]   ;;  %647 = vmatprep.subr.bf16.mxu1 %v1422_v17  ;;  %v54_v21 = vpack.c.bf16 %v48_v19, %v48_v19  ;;  %v1434_v25 = vld [vmem:[%s2028_s2 + $0x34] ss:$8 sps:$4 sm:$0xff]   ;;  %v1440_v29 = vld [vmem:[%s2028_s2 + $0x44] ss:$8 sps:$4 sm:$0xff]  }
   0xa   :  { %v1436_v27 = vld [vmem:[%s2028_s2 + $0x30] ss:$8 sps:$4 sm:$0xff]   ;;  %v1398_v28 = vld [vmem:[%s2028_s2 + $0x194] ss:$8 sps:$4 sm:$0xff]   ;;  %v1442_v31 = vld [vmem:[%s2028_s2 + $0x40] ss:$8 sps:$4 sm:$0xff]  }
   0xb   :  { %691 = vmatpush1.bf16.msra.mxu0 %v1379_v5  ;;  %718 = vmatprep.mubr.bf16.mxu0 %v54_v21  ;;  %v1400_v30 = vld [vmem:[%s2028_s2 + $0x190] ss:$8 sps:$4 sm:$0xff]   ;;  %v1401_v32 = vld [vmem:[%s2028_s2 + $0x1a4] ss:$8 sps:$4 sm:$0xff]   ;;  %v1446_v33 = vld [vmem:[%s2028_s2 + $0x54] ss:$8 sps:$4 sm:$0xff]  }
   0xc   :  { %692 = vmatprep.subr.bf16.mxu0 %v1380_v6  ;;  %648 = vmatpush1.bf16.msra.mxu1 %v1424_v18  ;;  %v1403_v34 = vld [vmem:[%s2028_s2 + $0x1a0] ss:$8 sps:$4 sm:$0xff]   ;;  %v1448_v35 = vld [vmem:[%s2028_s2 + $0x50] ss:$8 sps:$4 sm:$0xff]   ;;  %v1404_v36 = vld [vmem:[%s2028_s2 + $0x1b4] ss:$8 sps:$4 sm:$0xff]  }
   0xd   :  { %649 = vmatprep.subr.bf16.mxu1 %v1428_v22  ;;  %v1452_v37 = vld [vmem:[%s2028_s2 + $0x64] ss:$8 sps:$4 sm:$0xff]   ;;  %v1406_v38 = vld [vmem:[%s2028_s2 + $0x1b0] ss:$8 sps:$4 sm:$0xff]   ;;  %v1454_v39 = vld [vmem:[%s2028_s2 + $0x60] ss:$8 sps:$4 sm:$0xff]  }
   0xe   :  { %v1407_v40 = vld [vmem:[%s2028_s2 + $0x1c4] ss:$8 sps:$4 sm:$0xff]   ;;  %v1458_v41 = vld [vmem:[%s2028_s2 + $0x74] ss:$8 sps:$4 sm:$0xff]   ;;  %v1409_v42 = vld [vmem:[%s2028_s2 + $0x1c0] ss:$8 sps:$4 sm:$0xff]  }
   0xf   :  { %693 = vmatpush1.bf16.msra.mxu0 %v1382_v7  ;;  %v1460_v43 = vld [vmem:[%s2028_s2 + $0x70] ss:$8 sps:$4 sm:$0xff]   ;;  %v1410_v44 = vld [vmem:[%s2028_s2 + $0x1d4] ss:$8 sps:$4 sm:$0xff]   ;;  %v1464_v45 = vld [vmem:[%s2028_s2 + $0x84] ss:$8 sps:$4 sm:$0xff]  }
  0x10   :  { %694 = vmatprep.subr.bf16.mxu0 %v1383_v8  ;;  %650 = vmatpush1.bf16.msra.mxu1 %v1430_v23  ;;  %v1412_v46 = vld [vmem:[%s2028_s2 + $0x1d0] ss:$8 sps:$4 sm:$0xff]   ;;  %v1466_v47 = vld [vmem:[%s2028_s2 + $0x80] ss:$8 sps:$4 sm:$0xff]   ;;  %v1413_v48 = vld [vmem:[%s2028_s2 + $0x1e4] ss:$8 sps:$4 sm:$0xff]  }
  0x11   :  { %651 = vmatprep.subr.bf16.mxu1 %v1434_v25  ;;  %v1470_v49 = vld [vmem:[%s2028_s2 + $0x94] ss:$8 sps:$4 sm:$0xff]   ;;  %v1415_v50 = vld [vmem:[%s2028_s2 + $0x1e0] ss:$8 sps:$4 sm:$0xff]   ;;  %v1472_v51 = vld [vmem:[%s2028_s2 + $0x90] ss:$8 sps:$4 sm:$0xff]  }
  0x12   :  { %v1419_v52 = vld [vmem:[%s2028_s2 + $0x1f4] ss:$8 sps:$4 sm:$0xff]   ;;  %v1476_v53 = vld [vmem:[%s2028_s2 + $0xa4] ss:$8 sps:$4 sm:$0xff]   ;;  %v1421_v54 = vld [vmem:[%s2028_s2 + $0x1f0] ss:$8 sps:$4 sm:$0xff]  }
  0x13   :  { %695 = vmatpush1.bf16.msra.mxu0 %v1385_v9  ;;  %v47_v55 = vld [vmem:[%s2029_s0 + $0x10] sm:$0xff]  ;;  %v1478_v56 = vld [vmem:[%s2028_s2 + $0xa0] ss:$8 sps:$4 sm:$0xff]   ;;  %v1427_v57 = vld [vmem:[%s2028_s2 + $0x204] ss:$8 sps:$4 sm:$0xff]   ;;  %vm948_vm5 = vcmask 244736  }
  0x14   :  { %696 = vmatprep.subr.bf16.mxu0 %v1386_v10  ;;  %652 = vmatpush1.bf16.msra.mxu1 %v1436_v27  ;;  %v1482_v58 = vld [vmem:[%s2028_s2 + $0xb4] ss:$8 sps:$4 sm:$0xff]   ;;  %v1425_v59 = vld [vmem:[%s2028_s2 + $0x200] ss:$8 sps:$4 sm:$0xff]   ;;  %v53_v60 = vpack.c.bf16 %v47_v55, %v47_v55  ;;  %v1484_v62 = vld [vmem:[%s2028_s2 + $0xb0] ss:$8 sps:$4 sm:$0xff]  }
  0x15   :  { %653 = vmatprep.subr.bf16.mxu1 %v1440_v29  ;;  %v1433_v61 = vld [vmem:[%s2028_s2 + $0x214] ss:$8 sps:$4 sm:$0xff]   ;;  %v46_v63 = vld [vmem:[%s2029_s0 + $0x8] sm:$0xff]  ;;  %v1431_v2 = vld [vmem:[%s2028_s2 + $0x210] ss:$8 sps:$4 sm:$0xff]   ;;  %vm1005_vm6 = vcmask 162816  }
  0x16   :  { %v1488_v0 = vld [vmem:[%s2028_s2 + $0xc4] ss:$8 sps:$4 sm:$0xff]   ;;  %v52_v1 = vpack.c.bf16 %v46_v63, %v46_v63  ;;  %v1490_v6 = vld [vmem:[%s2028_s2 + $0xc0] ss:$8 sps:$4 sm:$0xff]   ;;  %v1494_v7 = vld [vmem:[%s2028_s2 + $0xd4] ss:$8 sps:$4 sm:$0xff]  }
  0x17   :  { %697 = vmatpush1.bf16.msra.mxu0 %v1388_v11  ;;  %v50_v3 = vld [vmem:[%s2029_s0 + $0x28] sm:$0xff]  ;;  %v1445_v9 = vld [vmem:[%s2028_s2 + $0x234] ss:$8 sps:$4 sm:$0xff]   ;;  %v1496_v10 = vld [vmem:[%s2028_s2 + $0xd0] ss:$8 sps:$4 sm:$0xff]   ;;  %vm1142_vm7 = vcmask 1042432  }
  0x18   :  { %698 = vmatprep.subr.bf16.mxu0 %v1389_v12  ;;  %654 = vmatpush1.bf16.msra.mxu1 %v1442_v31  ;;  %v1439_v4 = vld [vmem:[%s2028_s2 + $0x224] ss:$8 sps:$4 sm:$0xff]   ;;  %v56_v5 = vpack.c.bf16 %v50_v3, %v50_v3  ;;  %v1437_v8 = vld [vmem:[%s2028_s2 + $0x220] ss:$8 sps:$4 sm:$0xff]   ;;  %v1443_v12 = vld [vmem:[%s2028_s2 + $0x230] ss:$8 sps:$4 sm:$0xff]  }
  0x19   :  { %655 = vmatprep.subr.bf16.mxu1 %v1446_v33  ;;  %677 = vmatprep.mubr.bf16.mxu1 %v52_v1  ;;  %v1500_v11 = vld [vmem:[%s2028_s2 + $0xe4] ss:$8 sps:$4 sm:$0xff]   ;;  %v1502_v14 = vld [vmem:[%s2028_s2 + $0xe0] ss:$8 sps:$4 sm:$0xff]   ;;  %v1508_v17 = vld [vmem:[%s2028_s2 + $0xf0] ss:$8 sps:$4 sm:$0xff]   ;;  %v155_v1 = vlaneseq }
  0x1a   :  { %v1451_v13 = vld [vmem:[%s2028_s2 + $0x244] ss:$8 sps:$4 sm:$0xff]   ;;  %v1457_v19 = vld [vmem:[%s2028_s2 + $0x254] ss:$8 sps:$4 sm:$0xff]   ;;  %v1455_v21 = vld [vmem:[%s2028_s2 + $0x250] ss:$8 sps:$4 sm:$0xff]  }
  0x1b   :  { %699 = vmatpush1.bf16.msra.mxu0 %v1391_v15  ;;  %v1506_v15 = vld [vmem:[%s2028_s2 + $0xf4] ss:$8 sps:$4 sm:$0xff]   ;;  %v45_v18 = vld [vmem:[%s2029_s0] sm:$0xff]  ;;  %vm1138_vm8 = vcmask 39936   ;;  %vm1188_vm9 = vcmask 15360  }
  0x1c   :  { %700 = vmatprep.subr.bf16.mxu0 %v1392_v16  ;;  %656 = vmatpush1.bf16.msra.mxu1 %v1448_v35  ;;  %v1449_v16 = vld [vmem:[%s2028_s2 + $0x240] ss:$8 sps:$4 sm:$0xff]   ;;  %v1463_v23 = vld [vmem:[%s2028_s2 + $0x264] ss:$8 sps:$4 sm:$0xff]   ;;  %v1469_v27 = vld [vmem:[%s2028_s2 + $0x274] ss:$8 sps:$4 sm:$0xff]  }
  0x1d   :  { %657 = vmatprep.subr.bf16.mxu1 %v1452_v37  ;;  %v1515_v22 = vld [vmem:[%s2030_s4] sm:$0xff]   ;;  %v1517_v29 = vld [vmem:[%s2030_s4 + $0x10] sm:$0xff]  }
  0x1e   :  { %v1461_v25 = vld [vmem:[%s2028_s2 + $0x260] ss:$8 sps:$4 sm:$0xff]   ;;  %v1481_v33 = vld [vmem:[%s2028_s2 + $0x294] ss:$8 sps:$4 sm:$0xff]  }
  0x1f   :  { %701 = vmatpush1.bf16.msra.mxu0 %v1394_v20  ;;  %v51_v20 = vpack.c.bf16 %v45_v18, %v45_v18  ;;  %v1473_v31 = vld [vmem:[%s2028_s2 + $0x280] ss:$8 sps:$4 sm:$0xff]   ;;  %v1525_v55 = vld [vmem:[%s2030_s4 + $0x50] sm:$0xff]  }
  0x20   :  { %702 = vmatprep.subr.bf16.mxu0 %v1395_v24  ;;  %658 = vmatpush1.bf16.msra.mxu1 %v1454_v39  ;;  %v1534_v24 = vmov 0   ;;  %v1519_v35 = vld [vmem:[%s2030_s4 + $0x20] sm:$0xff]   ;;  %v1493_v39 = vld [vmem:[%s2028_s2 + $0x2b4] ss:$8 sps:$4 sm:$0xff]  }
  0x21   :  { %659 = vmatprep.subr.bf16.mxu1 %v1458_v41  ;;  %v1485_v37 = vld [vmem:[%s2028_s2 + $0x2a0] ss:$8 sps:$4 sm:$0xff]   ;;  %v1521_v41 = vld [vmem:[%s2030_s4 + $0x30] sm:$0xff]  }
  0x23   :  { %703 = vmatpush1.bf16.msra.mxu0 %v1397_v26  ;;  %v1516_v26 = vld [vmem:[%s2030_s4 + $0x8] sm:$0xff]  }
  0x24   :  { %704 = vmatprep.subr.bf16.mxu0 %v1398_v28  ;;  %660 = vmatpush1.bf16.msra.mxu1 %v1460_v43  ;;  %v1467_v28 = vld [vmem:[%s2028_s2 + $0x270] ss:$8 sps:$4 sm:$0xff]   ;;  %v1497_v43 = vld [vmem:[%s2028_s2 + $0x2c0] ss:$8 sps:$4 sm:$0xff]  }
  0x25   :  { %661 = vmatprep.subr.bf16.mxu1 %v1464_v45  ;;  %v1505_v45 = vld [vmem:[%s2028_s2 + $0x2d4] ss:$8 sps:$4 sm:$0xff]  }
  0x27   :  { %705 = vmatpush1.bf16.msra.mxu0 %v1400_v30  ;;  %v1475_v30 = vld [vmem:[%s2028_s2 + $0x284] ss:$8 sps:$4 sm:$0xff]  }
  0x28   :  { %706 = vmatprep.subr.bf16.mxu0 %v1401_v32  ;;  %662 = vmatpush1.bf16.msra.mxu1 %v1466_v47  ;;  %v1518_v32 = vld [vmem:[%s2030_s4 + $0x18] sm:$0xff]   ;;  %v1523_v47 = vld [vmem:[%s2030_s4 + $0x40] sm:$0xff]  }
  0x29   :  { %663 = vmatprep.subr.bf16.mxu1 %v1470_v49  ;;  %v1509_v49 = vld [vmem:[%s2028_s2 + $0x2e0] ss:$8 sps:$4 sm:$0xff]  }
  0x2b   :  { %707 = vmatpush1.bf16.msra.mxu0 %v1403_v34  ;;  %v1479_v34 = vld [vmem:[%s2028_s2 + $0x290] ss:$8 sps:$4 sm:$0xff]  }
  0x2c   :  { %708 = vmatprep.subr.bf16.mxu0 %v1404_v36  ;;  %664 = vmatpush1.bf16.msra.mxu1 %v1472_v51  ;;  %v1487_v36 = vld [vmem:[%s2028_s2 + $0x2a4] ss:$8 sps:$4 sm:$0xff]   ;;  %v1514_v51 = vld [vmem:[%s2028_s2 + $0x2f4] ss:$8 sps:$4 sm:$0xff]  }
  0x2d   :  { %665 = vmatprep.subr.bf16.mxu1 %v1476_v53  ;;  %v49_v53 = vld [vmem:[%s2029_s0 + $0x20] sm:$0xff] }
  0x2f   :  { %709 = vmatpush1.bf16.msra.mxu0 %v1406_v38  ;;  %v1520_v38 = vld [vmem:[%s2030_s4 + $0x28] sm:$0xff]  }
  0x30   :  { %710 = vmatprep.subr.bf16.mxu0 %v1407_v40  ;;  %666 = vmatpush1.bf16.msra.mxu1 %v1478_v56  ;;  %v1491_v40 = vld [vmem:[%s2028_s2 + $0x2b0] ss:$8 sps:$4 sm:$0xff]  }
  0x31   :  { %667 = vmatprep.subr.bf16.mxu1 %v1482_v58  ;;  %v1526_v56 = vld [vmem:[%s2030_s4 + $0x58] sm:$0xff]  }
  0x33   :  { %711 = vmatpush1.bf16.msra.mxu0 %v1409_v42  ;;  %v1499_v42 = vld [vmem:[%s2028_s2 + $0x2c4] ss:$8 sps:$4 sm:$0xff]  }
  0x34   :  { %712 = vmatprep.subr.bf16.mxu0 %v1410_v44  ;;  %668 = vmatpush1.bf16.msra.mxu1 %v1484_v62  ;;  %v1522_v44 = vld [vmem:[%s2030_s4 + $0x38] sm:$0xff]  }
  0x35   :  { %669 = vmatprep.subr.bf16.mxu1 %v1488_v0 }
  0x37   :  { %713 = vmatpush1.bf16.msra.mxu0 %v1412_v46  ;;  %v1503_v46 = vld [vmem:[%s2028_s2 + $0x2d0] ss:$8 sps:$4 sm:$0xff]  }
  0x38   :  { %714 = vmatprep.subr.bf16.mxu0 %v1413_v48  ;;  %670 = vmatpush1.bf16.msra.mxu1 %v1490_v6  ;;  %v1511_v48 = vld [vmem:[%s2028_s2 + $0x2e4] ss:$8 sps:$4 sm:$0xff]  }
  0x39   :  { %671 = vmatprep.subr.bf16.mxu1 %v1494_v7 }
  0x3b   :  { %715 = vmatpush1.bf16.msra.mxu0 %v1415_v50  ;;  %v1524_v50 = vld [vmem:[%s2030_s4 + $0x48] sm:$0xff]  }
  0x3c   :  { %716 = vmatprep.subr.bf16.mxu0 %v1419_v52  ;;  %672 = vmatpush1.bf16.msra.mxu1 %v1496_v10  ;;  %v1512_v52 = vld [vmem:[%s2028_s2 + $0x2f0] ss:$8 sps:$4 sm:$0xff]  }
  0x3d   :  { %673 = vmatprep.subr.bf16.mxu1 %v1500_v11 }
  0x3f   :  { %717 = vmatpush1.bf16.msra.mxu0 %v1421_v54  ;;  %v55_v54 = vpack.c.bf16 %v49_v53, %v49_v53 }
  0x40   :  { %727 = vmatprep.subr.bf16.mxu0 %v1427_v57  ;;  %674 = vmatpush1.bf16.msra.mxu1 %v1502_v14  ;;  %v1527_v57 = vld [vmem:[%s2030_s4 + $0x60] ss:$0 sps:$4 sm:$0xff]  }
  0x41   :  { %675 = vmatprep.subr.bf16.mxu1 %v1506_v15  ;;  %v885_v58 = vsel %vm883_vm0, %v1527_v57, 0 }
  0x42   :  { %719 = vmatmul.mubr.bf16.vlgmr.msra.gmra.mrb[0].mxu0 %v53_v60  ;;  %v1528_v60 = vld [vmem:[%s2031_s7] sm:$0xff]  }
  0x43   :  { %728 = vmatpush1.bf16.msra.mxu0 %v1425_v59  ;;  %759 = vmatprep.mubr.bf16.mxu0 %v56_v5  ;;  %v1535_v59 = vmov 0.0  }
  0x44   :  { %729 = vmatprep.subr.bf16.mxu0 %v1433_v61  ;;  %676 = vmatpush1.bf16.msra.mxu1 %v1508_v17 }
  0x45   :  { %887 = vmatprep.subr.bf16.mxu1 %v1534_v24 }
  0x47   :  { %730 = vmatpush1.bf16.msra.mxu0 %v1431_v2  ;;  %678 = vmatmul.mubr.bf16.vlgmr.msra.gmra.mrb[0].mxu1 %v51_v20  ;;  %v156_v2 = vshrl.u32 %v155_v1, 7 }
  0x48   :  { %731 = vmatprep.subr.bf16.mxu0 %v1439_v4  ;;  %888 = vmatpush1.bf16.msra.mxu1 %v1515_v22  ;;  %v153_v4 = vld [vmem:[%s2033_s3] sm:$0x3] }
  0x49   :  { %889 = vmatprep.subr.bf16.mxu1 %v1534_v24  ;;  %v157_v3 = vsub.s32 0, %v156_v2  ;;  %v161_v5 = vsub.s32 1, %v156_v2 }
  0x4b   :  { %732 = vmatpush1.bf16.msra.mxu0 %v1437_v8  ;;  %v158_v6 = vrot.slane %v153_v4, %v157_v3  ;;  %v162_v7 = vrot.slane %v153_v4, %v161_v5 }
  0x4c   :  { %733 = vmatprep.subr.bf16.mxu0 %v1445_v9  ;;  %890 = vmatpush1.bf16.msra.mxu1 %v1516_v26  ;;  %v1290_v26 = vld [vmem:[%s2035_s5] ss:$0 sm:$0xff] }
  0x4d   :  { %891 = vmatprep.subr.bf16.mxu1 %v1534_v24 }
  0x4f   :  { %734 = vmatpush1.bf16.msra.mxu0 %v1443_v12 }
  0x50   :  { %735 = vmatprep.subr.bf16.mxu0 %v1451_v13  ;;  %892 = vmatpush1.bf16.msra.mxu1 %v1517_v29 }
  0x51   :  { %893 = vmatprep.subr.bf16.mxu1 %v1534_v24 }
  0x53   :  { %736 = vmatpush1.bf16.msra.mxu0 %v1449_v16 }
  0x54   :  { %737 = vmatprep.subr.bf16.mxu0 %v1457_v19  ;;  %894 = vmatpush1.bf16.msra.mxu1 %v1518_v32  ;;  %v1529_v19 = vld [vmem:[%s2032_s6] sm:$0xff]  }
  0x55   :  { %895 = vmatprep.subr.bf16.mxu1 %v1534_v24 }
  0x57   :  { %738 = vmatpush1.bf16.msra.mxu0 %v1455_v21  ;;  %v1530_v21 = vld [vmem:[%s2031_s7 + $0x8] sm:$0x7f]  }
  0x58   :  { %739 = vmatprep.subr.bf16.mxu0 %v1463_v23  ;;  %896 = vmatpush1.bf16.msra.mxu1 %v1519_v35  ;;  %v954_v22 = vsel %vm952_vm2, %v1530_v21, 0  ;;  %v1531_v23 = vld [vmem:[%s2032_s6 + $0x8] ss:$0 sps:$4 sm:$0x33]  }
  0x59   :  { %897 = vmatprep.subr.bf16.mxu1 %v1534_v24 }
  0x5b   :  { %740 = vmatpush1.bf16.msra.mxu0 %v1461_v25  ;;  %v928_v25 = vld [vmem:[%s2034_s1] sm:$0xf] }
  0x5c   :  { %741 = vmatprep.subr.bf16.mxu0 %v1469_v27  ;;  %898 = vmatpush1.bf16.msra.mxu1 %v1520_v38  ;;  %v1532_v38 = vld [vmem:[%s2036_s9] sm:$0xff]  }
  0x5d   :  { %899 = vmatprep.subr.bf16.mxu1 %v1534_v24 }
  0x5f   :  { %742 = vmatpush1.bf16.msra.mxu0 %v1467_v28 }
  0x60   :  { %743 = vmatprep.subr.bf16.mxu0 %v1475_v30  ;;  %900 = vmatpush1.bf16.msra.mxu1 %v1521_v41  ;;  %v1537_v41 = vmov 65535  }
  0x61   :  { %901 = vmatprep.subr.bf16.mxu1 %v1534_v24 }
  0x63   :  { %744 = vmatpush1.bf16.msra.mxu0 %v1473_v31 }
  0x64   :  { %745 = vmatprep.subr.bf16.mxu0 %v1481_v33  ;;  %902 = vmatpush1.bf16.msra.mxu1 %v1522_v44  ;;  %v1311_v44 = vld [vmem:[%s2037_s8] ss:$0 sm:$0xff] }
  0x65   :  { %903 = vmatprep.subr.bf16.mxu1 %v1534_v24 }
  0x67   :  { %746 = vmatpush1.bf16.msra.mxu0 %v1479_v34 }
  0x68   :  { %747 = vmatprep.subr.bf16.mxu0 %v1487_v36  ;;  %904 = vmatpush1.bf16.msra.mxu1 %v1523_v47 }
  0x69   :  { %905 = vmatprep.subr.bf16.mxu1 %v1534_v24 }
  0x6b   :  { %748 = vmatpush1.bf16.msra.mxu0 %v1485_v37 }
  0x6c   :  { %749 = vmatprep.subr.bf16.mxu0 %v1493_v39  ;;  %906 = vmatpush1.bf16.msra.mxu1 %v1524_v50  ;;  %v1533_v39 = vld [vmem:[%s2036_s9 + $0x8] ss:$0 sps:$4 sm:$0x33]   ;;  %v1130_v50 = vld [vmem:[%s2038_s11] sm:$0x7] }
  0x6d   :  { %907 = vmatprep.subr.bf16.mxu1 %v1534_v24 }
  0x6f   :  { %750 = vmatpush1.bf16.msra.mxu0 %v1491_v40  ;;  %v1086_v40 = vsel %vm1009_vm3, %v1533_v39, 0 }
  0x70   :  { %751 = vmatprep.subr.bf16.mxu0 %v1499_v42  ;;  %908 = vmatpush1.bf16.msra.mxu1 %v1525_v55  ;;  %v1143_v42 = vsel %vm1009_vm3, 4294967295, %v1537_v41  ;;  %v1312_v55 = vld [vmem:[%s2039_s10] ss:$0 sm:$0xff] }
  0x71   :  { %909 = vmatprep.subr.bf16.mxu1 %v1534_v24 }
  0x73   :  { %752 = vmatpush1.bf16.msra.mxu0 %v1497_v43 }
  0x74   :  { %753 = vmatprep.subr.bf16.mxu0 %v1505_v45  ;;  %910 = vmatpush1.bf16.msra.mxu1 %v1526_v56 }
  0x75   :  { %911 = vmatprep.subr.bf16.mxu1 %v1534_v24  ;;  %v1011_v24 = vsel %vm1009_vm3, %v1531_v23, 0 }
  0x77   :  { %754 = vmatpush1.bf16.msra.mxu0 %v1503_v46 }
  0x78   :  { %755 = vmatprep.subr.bf16.mxu0 %v1511_v48  ;;  %912 = vmatpush1.bf16.msra.mxu1 %v885_v58 }
  0x79   :  { %1337 = vmatprep.subr.bf16.mxu1 %v1535_v59 }
  0x7b   :  { %756 = vmatpush1.bf16.msra.mxu0 %v1509_v49 }
  0x7c   :  { %757 = vmatprep.subr.bf16.mxu0 %v1514_v51  ;;  %v1144_v51 = vsel %vm1142_vm7, %v1143_v42, 0 }
  0x7d   :  { %v1146_v53 = vand.u32 %v1144_v51, %v1130_v50 }
  0x7f   :  { %758 = vmatpush1.bf16.msra.mxu0 %v1512_v52 }
  0x80   :  { %1329 = vmatprep.subr.bf16.mxu0 %v1535_v59 }
  0x82   :  { %760 = vmatmul.mubr.bf16.vlgmr.msra.gmra.mrb[0].mxu0 %v55_v54 }
  0x83   :  { %1330 = vmatpush3.bf16.msra.mxu0 %v1528_v60  ;;  %1333 = vmatprep.mubr.msk.bf16.mxu0 %vm1536_vm4, %v1535_v59 }
  0x84   :  { %1331 = vmatprep.subr.bf16.mxu0 %v1535_v59 }
  0x87   :  { %1332 = vmatpush3.bf16.msra.mxu0 %v954_v22 }
  0x8a   :  { %1334 = vmatmul.mubr.msk.bf16.vlgmr.msra.gmra.mrb[4].mxu0 %vm948_vm5, %v928_v25 }
 0x11a   :  { %v679_v61 = vpop.f32.mrb[0].mxu1 }
 0x11b   :  { %v681_v62 = vpop.f32.mrb[1].mxu1  ;;  %v680_v8 = vadd.f32 %v679_v61, %v158_v6 }
 0x11c   :  { %v683_v63 = vpop.f32.mrb[2].mxu1  ;;  %v682_v9 = vadd.f32 %v681_v62, %v162_v7 }
 0x11d   :  { %v684_v0 = vpop.f32.mrb[3].mxu1 }
 0x11e   :  { %v1316_v0 = vld [vmem:[%s2040_s12] ss:$0 sm:$0xff] }
 0x155   :  { %v761_v10 = vpop.f32.mrb[0].mxu0 }
 0x156   :  { %v1360_v11 = vadd.f32 %v761_v10, %v680_v8  ;;  %v763_v12 = vpop.f32.mrb[1].mxu0 }
 0x157   :  { %v1362_v13 = vadd.f32 %v763_v12, %v682_v9  ;;  %v765_v14 = vpop.f32.mrb[2].mxu0 }
 0x158   :  { %v768_v15 = vmax.f32 %v1360_v11, 0.0  ;;  %v766_v16 = vpop.f32.mrb[3].mxu0 }
 0x159   :  { %v769_v17 = vmax.f32 %v1362_v13, 0.0 }
 0x15a   :  { %v770_v20 = vpack.c.bf16 %v768_v15, %v768_v15 }
 0x15b   :  { %v771_v18 = vpack.c.bf16 %v769_v17, %v769_v17 }
 0x15d   :  { %1304 = vmatprep.mubr.msk.bf16.mxu1 %vm879_vm1, %v771_v18  ;;  %v990_v34 = vpop.f32.mrb[4].mxu0 }
 0x15e   :  { %920 = vmatmul.mubr.bf16.vlgmr.msra.gmra.mrb[4].mxu1 %v770_v20  ;;  %v1335_v35 = vpop.f32.mrb[5].mxu0 }
 0x15f   :  { %1338 = vmatpush3.bf16.msra.mxu1 %v1529_v19  ;;  %1341 = vmatprep.mubr.msk.bf16.mxu1 %vm1536_vm4, %v1535_v59  ;;  %v993_v36 = vpop.f32.mrb[6].mxu0 }
 0x160   :  { %1339 = vmatprep.subr.bf16.mxu1 %v1535_v59  ;;  %v1336_v37 = vpop.f32.mrb[7].mxu0 }
 0x163   :  { %1340 = vmatpush3.bf16.msra.mxu1 %v1011_v24 }
 0x164   :  { %1345 = vmatprep.subr.bf16.mxu1 %v1535_v59 }
 0x231   :  { %v921_v27 = vpop.f32.mrb[4].mxu1 }
 0x232   :  { %v922_v28 = vadd.f32 %v1290_v26, %v921_v27  ;;  %v923_v29 = vpop.f32.mrb[5].mxu1 }
 0x233   :  { %v924_v30 = vpop.f32.mrb[6].mxu1 }
 0x234   :  { %v927_v31 = vmax.f32 %v922_v28, 0.0  ;;  %v925_v32 = vpop.f32.mrb[7].mxu1 }
 0x236   :  { %v929_v33 = vpack.c.bf16 %v927_v31, %v927_v31 }
 0x238   :  { %1342 = vmatmul.mubr.msk.bf16.vlgmr.msra.gmra.mrb[8].mxu1 %vm1005_vm6, %v929_v33 }
 0x239   :  { %1349 = vmatprep.mubr.msk.bf16.mxu1 %vm1536_vm4, %v1535_v59  ;;  %1346 = vmatpush3.bf16.msra.mxu1 %v1532_v38 }
 0x23a   :  { %1347 = vmatprep.subr.bf16.mxu1 %v1535_v59 }
 0x23d   :  { %1348 = vmatpush3.bf16.msra.mxu1 %v1086_v40 }
 0x23e   :  { %1353 = vmatprep.subr.bf16.mxu1 %v1535_v59 }
 0x30b   :  { %v1047_v43 = vpop.f32.mrb[8].mxu1 }
 0x30c   :  { %v1048_v45 = vadd.f32 %v1047_v43, %v990_v34  ;;  %v1343_v46 = vpop.f32.mrb[9].mxu1 }
 0x30d   :  { %v1050_v47 = vpop.f32.mrb[10].mxu1 }
 0x30e   :  { %v1060_v48 = vadd.f32 %v1311_v44, %v1048_v45  ;;  %v1344_v49 = vpop.f32.mrb[11].mxu1 }
 0x310   :  { %v1061_v52 = vmax.f32 %v1060_v48, 0.0 }
 0x312   :  { %v1062_v54 = vpack.c.bf16 %v1061_v52, %v1061_v52 }
 0x314   :  { %1350 = vmatmul.mubr.msk.bf16.vlgmr.msra.gmra.mrb[12].mxu1 %vm1005_vm6, %v1062_v54 }
 0x315   :  { %1354 = vmatpush3.bf16.msra.mxu1 %v1146_v53  ;;  %1355 = vmatprep.mubr.msk.bf16.mxu1 %vm1536_vm4, %v1535_v59 }
 0x3e7   :  { %v1122_v56 = vpop.f32.mrb[12].mxu1 }
 0x3e8   :  { %v1123_v57 = vadd.f32 %v1312_v55, %v1122_v56  ;;  %v1351_v58 = vpop.f32.mrb[13].mxu1 }
 0x3e9   :  { %v1125_v60 = vpop.f32.mrb[14].mxu1 }
 0x3ea   :  { %v1128_v61 = vmax.f32 %v1123_v57, 0.0  ;;  %v1352_v62 = vpop.f32.mrb[15].mxu1 }
 0x3ec   :  { %v1129_v63 = vpack.c.bf16 %v1128_v61, %v1128_v61 }
 0x3ee   :  { %1356 = vmatmul.mubr.msk.bf16.vlgmr.msra.gmra.mrb[16].mxu1 %vm1138_vm8, %v1129_v63 }
 0x4c1   :  { %v1182_v1 = vpop.f32.mrb[16].mxu1 }
 0x4c2   :  { %v1183_v59 = vadd.f32 %v1316_v0, %v1182_v1  ;;  %v1357_v2 = vpop.f32.mrb[17].mxu1 }
 0x4c3   :  { %v1185_v3 = vpop.f32.mrb[18].mxu1 }
 0x4c4   :  { %1189 = vst.msk [vmem:[%s2041_s13] sm:$0xff] %vm1188_vm9, %v1183_v59  ;;  %v1358_v4 = vpop.f32.mrb[19].mxu1 }

</bundles_post_ra>
